<compile_context>
chip_gen: v5e
topology: v5e:2x2
jax: 0.10.0
libtpu: 0.0.40
codegen_flags: <defaults>
</compile_context>

<pallas_src>
import functools
import math

import jax
import jax.numpy as jnp
from jax import lax
from jax.experimental import pallas as pl
from jax.experimental.pallas import tpu as pltpu

_MASK_VALUE = -1e30  # large finite negative (avoids -inf - -inf = NaN on fully-masked rows)


def _mha_kernel(*refs, num_heads, node_num, batch_block, cross, masked):
    """One grid step: a (Bb*N, E) row block of the flattened activations.

    refs layout (inputs, outputs, scratch):
      self :  x, [mask], w_qkv_t (E,3E), b_qkv (1,3E), w_out_t (E,E), b_out (1,E),
              o, qp (Bb*N,E), kvp (Bb*N,2E), ctx (Bb*N,E)
      cross:  q, kv, [mask], w_q_t (E,E), b_q (1,E), w_kv_t (E,2E), b_kv (1,2E),
              w_out_t (E,E), b_out (1,E), o, qp, kvp, ctx
    All weights are pre-transposed to the `x @ W` form and the 1/sqrt(D) scale is
    already folded into the Q projection on the host.
    """
    it = iter(refs)
    q_ref = next(it)
    kv_ref = next(it) if cross else q_ref          # self-attn: same ref, DMA'd once
    mask_ref = next(it) if masked else None
    if cross:
        wq_ref, bq_ref, wkv_ref, bkv_ref = next(it), next(it), next(it), next(it)
    else:
        wqkv_ref, bqkv_ref = next(it), next(it)
    wo_ref, bo_ref = next(it), next(it)
    o_ref = next(it)
    qp_ref, kvp_ref, ctx_ref = next(it), next(it), next(it)

    N, H, Bb = node_num, num_heads, batch_block
    rows, E = q_ref.shape
    D = E // H
    cdt = qp_ref.dtype                              # MXU operand dtype (f32 or bf16)

    # ---- fused input projection: wide (Bb*N, E) x (E, {3E|E,2E}) MXU matmuls ----
    if cross:
        qp_ref[...] = (jnp.dot(q_ref[...], wq_ref[...],
                               preferred_element_type=jnp.float32)
                       + bq_ref[...]).astype(cdt)
        kvp_ref[...] = (jnp.dot(kv_ref[...], wkv_ref[...],
                                preferred_element_type=jnp.float32)
                        + bkv_ref[...]).astype(cdt)
    else:
        qkv = (jnp.dot(q_ref[...], wqkv_ref[...],
                       preferred_element_type=jnp.float32) + bqkv_ref[...])
        qp_ref[...] = qkv[:, :E].astype(cdt)        # Q (already 1/sqrt(D)-scaled)
        kvp_ref[...] = qkv[:, E:].astype(cdt)       # K | V

    # ---- per-batch-row attention; fori_loop bounds live ranges (no Bb-wide unroll) ----
    # TODO(synk): for large N, add a KV grid axis with an online-softmax accumulator
    # (flash pattern) instead of the full (N, N) score tile per head.
    def per_row(b, carry):
        base = b * N
        if N % 8 == 0:
            base = pl.multiple_of(base, 8)
        qblk = qp_ref[pl.ds(base, N), :]            # (N, E)
        kvblk = kvp_ref[pl.ds(base, N), :]          # (N, 2E)
        if masked:
            # Hoisted out of the head loop (JAX does not CSE broadcast_in_dim).
            bias = jnp.broadcast_to(mask_ref[b], (N, N))
        heads = []
        for h in range(H):                          # static unroll: H is small here
            qh = qblk[:, h * D:(h + 1) * D]
            kh = kvblk[:, h * D:(h + 1) * D]
            vh = kvblk[:, E + h * D:E + (h + 1) * D]
            # Scores: contract K on its last dim -> no materialized transpose.
            s = lax.dot_general(qh, kh, (((1,), (1,)), ((), ())),
                                preferred_element_type=jnp.float32)   # (N, N)
            if masked:
                s = s + bias
            m = jnp.max(s, axis=-1, keepdims=True)
            p = jnp.exp(s - m)                                        # unnormalized, f32
            l = jnp.sum(p, axis=-1, keepdims=True)                    # (N, 1)
            oh = jnp.dot(p.astype(cdt), vh,
                         preferred_element_type=jnp.float32)          # (N, D)
            # Deferred softmax normalization on the small (N, D) result; EUP vrcp slot.
            heads.append(oh * pl.reciprocal(l, approx=True))
        ctx_b = jnp.concatenate(heads, axis=-1) if H > 1 else heads[0]  # (N, E)
        ctx_ref[pl.ds(base, N), :] = ctx_b.astype(cdt)
        return carry

    lax.fori_loop(0, Bb, per_row, 0, unroll=Bb <= 4)

    # ---- single wide output projection over the whole row block ----
    y = (jnp.dot(ctx_ref[...], wo_ref[...], preferred_element_type=jnp.float32)
         + bo_ref[...])
    o_ref[...] = y.astype(o_ref.dtype)


def _vmem_caps():
    """(block-sizing budget, compiler vmem_limit_bytes) derived from the chip's VMEM."""
    cap = 64 * 1024 * 1024                          # conservative fallback (v7x per-TC)
    try:
        info = pltpu.get_tpu_info()
        c = getattr(info, "vmem_capacity_bytes", None)
        if c:
            cap = int(c)
    except Exception:
        pass
    budget = min(cap * 3 // 8, 48 * 1024 * 1024)    # v7x ~24 MiB, v5e/v6e ~48 MiB
    limit = min(cap * 3 // 4, 96 * 1024 * 1024)     # v7x ~48 MiB, v5e/v6e ~96 MiB
    return budget, limit


def _pick_batch_block(B, N, E, H, act_itemsize, n_act_in, budget):
    """Largest batch chunk per grid step within the VMEM budget, preferring >=2 steps."""
    candidates = [bb for bb in range(1, B + 1)
                  if B % bb == 0 and (bb == B or (bb * N) % 8 == 0)]

    def vmem_bytes(bb):
        rows = bb * N
        io = 2 * (n_act_in + 1) * rows * E * act_itemsize      # double-buffered in/out
        scratch = rows * 4 * E * act_itemsize                   # qp + kvp + ctx slabs
        live = rows * 3 * E * 4                                  # f32 projection temporary
        live += N * 4 * E * 4 + 2 * N * N * 4                    # per-row working set
        weights = 2 * (4 * E * E + 4 * E) * act_itemsize         # double-buffered weights
        return io + scratch + live + weights

    feasible = [bb for bb in candidates if vmem_bytes(bb) <= budget]
    if not feasible:
        feasible = [candidates[0]]
    best = max(feasible)
    # Prefer >= 2 grid steps so v7x's two TensorCores both get work, unless that would
    # leave the MXU M dimension underfilled while a single step fills it.
    multi = [bb for bb in feasible if B // bb >= 2]
    if multi:
        best_multi = max(multi)
        if best_multi * N >= 256 or best * N < 256:
            best = best_multi
    return best


def attention_aggregation(layer_representation, params, *, num_heads,
                          cross_representation=None, key_padding_mask=None,
                          prefer_bf16_matmul=False):
    """Pallas forward of AttentionAggregation (nn.MultiheadAttention eval forward).

    layer_representation: [B, N, E] query (also key/value for self-attention)
    cross_representation: optional [B, N, E] key/value (cross-attention)
    key_padding_mask:     optional bool [B, N], True = padded key (ignored)
    params: (in_proj_weight [3E, E], in_proj_bias [3E],
             out_proj_weight [E, E], out_proj_bias [E])  -- PyTorch convention.
    prefer_bf16_matmul:   cast f32 activations/weights to bf16 for the MXU (f32 accum).
    """
    # TODO(synk): dropout is a train-mode-only op in nn.MultiheadAttention; the eval
    # forward applies none, so it is omitted here.
    w_in, b_in, w_out, b_out = params
    B, N, E = layer_representation.shape
    assert E % num_heads == 0
    D = E // num_heads
    out_dtype = layer_representation.dtype
    cross = cross_representation is not None
    masked = key_padding_mask is not None

    cdt = out_dtype
    if prefer_bf16_matmul and out_dtype == jnp.float32:
        cdt = jnp.bfloat16

    # ---- host-side one-time constant transforms (free relative to the kernel) ----
    scale = 1.0 / math.sqrt(D)
    w_in_t = jnp.asarray(w_in, jnp.float32).T                    # (E, 3E)
    w_in_t = w_in_t.at[:, :E].multiply(scale)                    # fold 1/sqrt(D) into Wq
    b_in_r = jnp.asarray(b_in, jnp.float32).reshape(1, 3 * E)
    b_in_r = b_in_r.at[:, :E].multiply(scale)                    # ... and into bq
    w_in_t = w_in_t.astype(cdt)
    w_out_t = jnp.asarray(w_out, jnp.float32).T.astype(cdt)      # (E, E)
    b_out_r = jnp.asarray(b_out, jnp.float32).reshape(1, E)

    # TODO(synk): for large models pad E to a multiple of 128 (lane-dense stores) and
    # single-buffer the constant weight BlockSpecs on v7x; left out at these tiny shapes.
    q2 = layer_representation.reshape(B * N, E).astype(cdt)
    kv2 = (cross_representation.reshape(B * N, E).astype(cdt) if cross else None)

    act_itemsize = jnp.dtype(cdt).itemsize
    budget, vmem_limit = _vmem_caps()
    bb = _pick_batch_block(B, N, E, num_heads, act_itemsize, 2 if cross else 1, budget)
    grid = (B // bb,)
    rows = bb * N

    row_spec = pl.BlockSpec((rows, E), lambda i: (i, 0))
    const = lambda shape: pl.BlockSpec(shape, lambda i: (0,) * len(shape))

    inputs, in_specs = [q2], [row_spec]
    if cross:
        inputs.append(kv2)
        in_specs.append(row_spec)
    if masked:
        mask_add = jnp.where(key_padding_mask, _MASK_VALUE, 0.0).astype(
            jnp.float32).reshape(B, 1, N)
        inputs.append(mask_add)
        in_specs.append(pl.BlockSpec((bb, 1, N), lambda i: (i, 0, 0)))
    if cross:
        inputs += [w_in_t[:, :E], b_in_r[:, :E], w_in_t[:, E:], b_in_r[:, E:]]
        in_specs += [const((E, E)), const((1, E)),
                     const((E, 2 * E)), const((1, 2 * E))]
    else:
        inputs += [w_in_t, b_in_r]
        in_specs += [const((E, 3 * E)), const((1, 3 * E))]
    inputs += [w_out_t, b_out_r]
    in_specs += [const((E, E)), const((1, E))]

    # Advisory cost estimate so XLA can overlap the custom call with surrounding ops.
    flops = 2 * B * N * E * 3 * E + 4 * B * N * N * E + 2 * B * N * E * E
    transcendentals = B * num_heads * N * (N + 1)
    bytes_accessed = (((2 if cross else 1) + 1) * B * N * E * act_itemsize
                      + (4 * E * E + 4 * E) * act_itemsize
                      + (B * N * 4 if masked else 0))
    cost = pl.CostEstimate(flops=flops, transcendentals=transcendentals,
                           bytes_accessed=bytes_accessed)

    kernel = functools.partial(_mha_kernel, num_heads=num_heads, node_num=N,
                               batch_block=bb, cross=cross, masked=masked)
    out = pl.pallas_call(
        kernel,
        out_shape=jax.ShapeDtypeStruct((B * N, E), out_dtype),
        grid=grid,
        in_specs=in_specs,
        out_specs=row_spec,
        scratch_shapes=[pltpu.VMEM((rows, E), cdt),        # Q projection slab
                        pltpu.VMEM((rows, 2 * E), cdt),    # K|V projection slab
                        pltpu.VMEM((rows, E), cdt)],       # per-head context (concat) slab
        compiler_params=pltpu.CompilerParams(
            dimension_semantics=("parallel",),
            vmem_limit_bytes=vmem_limit),
        cost_estimate=cost,
    )(*inputs)
    return out.reshape(B, N, E)


def mha_reference(q_in, kv_in, mask_add, w_in, b_in, w_out, b_out, num_heads):
    """Pure-JAX reference replicating nn.MultiheadAttention forward (eval)."""
    B, N, E = q_in.shape
    D = E // num_heads
    q = q_in @ w_in[:E].T + b_in[:E]
    k = kv_in @ w_in[E:2 * E].T + b_in[E:2 * E]
    v = kv_in @ w_in[2 * E:].T + b_in[2 * E:]
    q = q.reshape(B, N, num_heads, D).transpose(0, 2, 1, 3) / jnp.sqrt(D)
    k = k.reshape(B, N, num_heads, D).transpose(0, 2, 1, 3)
    v = v.reshape(B, N, num_heads, D).transpose(0, 2, 1, 3)
    s = jnp.einsum('bhqd,bhkd->bhqk', q, k) + mask_add[:, None, :, :]
    p = jax.nn.softmax(s, axis=-1)
    o = jnp.einsum('bhqk,bhkd->bhqd', p, v).transpose(0, 2, 1, 3).reshape(B, N, E)
    return o @ w_out.T + b_out


if __name__ == "__main__":
    B, N, E, H = 2, 8, 32, 4   # batch, node_num, embed_dim, num_heads

    key = jax.random.PRNGKey(0)
    k1, k2, k3, k4, k5, k6 = jax.random.split(key, 6)

    layer_rep = jax.random.normal(k1, (B, N, E), jnp.float32)
    cross_rep = jax.random.normal(k2, (B, N, E), jnp.float32)

    # Deterministic parameter init (shapes match nn.MultiheadAttention(E, H)).
    w_in = jax.random.normal(k3, (3 * E, E), jnp.float32) * 0.1
    b_in = jax.random.normal(k4, (3 * E,), jnp.float32) * 0.1
    w_out = jax.random.normal(k5, (E, E), jnp.float32) * 0.1
    b_out = jax.random.normal(k6, (E,), jnp.float32) * 0.1
    params = (w_in, b_in, w_out, b_out)

    # key_padding_mask: pad the last node of batch element 1
    kpm = jnp.zeros((B, N), bool).at[1, N - 1].set(True)

    # Self-attention (no mask), self-attention (masked), cross-attention (masked),
    # and a bf16-MXU self-attention run.
    out_self = attention_aggregation(layer_rep, params, num_heads=H)
    out_self_m = attention_aggregation(layer_rep, params, num_heads=H,
                                       key_padding_mask=kpm)
    out_cross = attention_aggregation(layer_rep, params, num_heads=H,
                                      cross_representation=cross_rep,
                                      key_padding_mask=kpm)
    out_self_bf16 = attention_aggregation(layer_rep, params, num_heads=H,
                                          prefer_bf16_matmul=True)
    jax.block_until_ready((out_self, out_self_m, out_cross, out_self_bf16))

    zero_mask = jnp.zeros((B, 1, N), jnp.float32)
    mask_add = jnp.where(kpm, _MASK_VALUE, 0.0).astype(jnp.float32).reshape(B, 1, N)
    ref_self = mha_reference(layer_rep, layer_rep, zero_mask,
                             w_in, b_in, w_out, b_out, H)
    ref_self_m = mha_reference(layer_rep, layer_rep, mask_add,
                               w_in, b_in, w_out, b_out, H)
    ref_cross = mha_reference(layer_rep, cross_rep, mask_add,
                              w_in, b_in, w_out, b_out, H)

    assert out_self.shape == (B, N, E)
    assert out_cross.shape == (B, N, E)
    # Tolerances relaxed from 1e-4 because the kernel uses the EUP approximate
    # reciprocal for the deferred softmax normalization.
    assert jnp.allclose(out_self, ref_self, atol=2e-3, rtol=2e-3)
    assert jnp.allclose(out_self_m, ref_self_m, atol=2e-3, rtol=2e-3)
    assert jnp.allclose(out_cross, ref_cross, atol=2e-3, rtol=2e-3)
    # bf16 MXU operands, f32 accumulation: looser tolerance.
    assert jnp.allclose(out_self_bf16, ref_self, atol=6e-2, rtol=6e-2)
    print("KERNEL_OK")
</pallas_src>

<mosaic_0001>
module attributes {stable_mosaic.version = 11 : i64} {
  func.func @_mha_kernel(%arg0: i32, %arg1: memref<8x32xf32, #tpu.memory_space<vmem>>, %arg2: memref<32x96xf32, #tpu.memory_space<vmem>>, %arg3: memref<1x96xf32, #tpu.memory_space<vmem>>, %arg4: memref<32x32xf32, #tpu.memory_space<vmem>>, %arg5: memref<1x32xf32, #tpu.memory_space<vmem>>, %arg6: memref<8x32xf32, #tpu.memory_space<vmem>>, %arg7: memref<8x32xf32, #tpu.memory_space<vmem>>, %arg8: memref<8x64xf32, #tpu.memory_space<vmem>>, %arg9: memref<8x32xf32, #tpu.memory_space<vmem>>) attributes {dimension_semantics = [#tpu.dimension_semantics<parallel>], iteration_bounds = array<i64: 2>, scalar_prefetch = 0 : i64, scratch_operands = 3 : i64, tpu.core_type = #tpu.core_type<tc>, window_params = [{transform_indices = @transform_0, window_bounds = array<i64: 8, 32>}, {pipeline_mode = #tpu.pipeline_mode<synchronous>, transform_indices = @transform_1, window_bounds = array<i64: 32, 96>}, {pipeline_mode = #tpu.pipeline_mode<synchronous>, transform_indices = @transform_2, window_bounds = array<i64: 1, 96>}, {pipeline_mode = #tpu.pipeline_mode<synchronous>, transform_indices = @transform_3, window_bounds = array<i64: 32, 32>}, {pipeline_mode = #tpu.pipeline_mode<synchronous>, transform_indices = @transform_4, window_bounds = array<i64: 1, 32>}, {transform_indices = @transform_5, window_bounds = array<i64: 8, 32>}]} {
    %c0 = arith.constant 0 : index
    %c0_0 = arith.constant 0 : index
    %0 = vector.load %arg1[%c0, %c0_0] : memref<8x32xf32, #tpu.memory_space<vmem>>, vector<8x32xf32>
    %c0_1 = arith.constant 0 : index
    %c0_2 = arith.constant 0 : index
    %1 = vector.load %arg2[%c0_1, %c0_2] : memref<32x96xf32, #tpu.memory_space<vmem>>, vector<32x96xf32>
    %cst = arith.constant dense<0.000000e+00> : vector<8x96xf32>
    %2 = tpu.matmul %0, %1, %cst {dimension_numbers = #tpu.dot_dimension_numbers<[1], [0], [0], [1], [0, 0, 1, 1], [], []>} : vector<8x32xf32>, vector<32x96xf32>, vector<8x96xf32> -> vector<8x96xf32>
    %c0_3 = arith.constant 0 : index
    %c0_4 = arith.constant 0 : index
    %3 = vector.load %arg3[%c0_3, %c0_4] : memref<1x96xf32, #tpu.memory_space<vmem>>, vector<1x96xf32>
    %4 = vector.broadcast %3 : vector<1x96xf32> to vector<8x96xf32>
    %5 = arith.addf %2, %4 : vector<8x96xf32>
    %6 = vector.extract_strided_slice %5 {offsets = [0, 0], sizes = [8, 32], strides = [1, 1]} : vector<8x96xf32> to vector<8x32xf32>
    %c0_5 = arith.constant 0 : index
    %c0_6 = arith.constant 0 : index
    %7 = vector.load %arg7[%c0_5, %c0_6] : memref<8x32xf32, #tpu.memory_space<vmem>>, vector<8x32xf32>
    tpu.vector_store %arg7[%c0_5, %c0_6], %6 {strides = array<i32>} : memref<8x32xf32, #tpu.memory_space<vmem>>, vector<8x32xf32>,
    %8 = vector.extract_strided_slice %5 {offsets = [0, 32], sizes = [8, 64], strides = [1, 1]} : vector<8x96xf32> to vector<8x64xf32>
    %c0_7 = arith.constant 0 : index
    %c0_8 = arith.constant 0 : index
    %9 = vector.load %arg8[%c0_7, %c0_8] : memref<8x64xf32, #tpu.memory_space<vmem>>, vector<8x64xf32>
    tpu.vector_store %arg8[%c0_7, %c0_8], %8 {strides = array<i32>} : memref<8x64xf32, #tpu.memory_space<vmem>>, vector<8x64xf32>,
    %c0_i32 = arith.constant 0 : i32
    %c8_i32 = arith.constant 8 : i32
    %10 = arith.muli %c0_i32, %c8_i32 : i32
    %11 = tpu.assume_multiple %10, 8 : i32
    %12 = arith.index_cast %11 : i32 to index
    %c0_9 = arith.constant 0 : index
    %13 = vector.load %arg7[%12, %c0_9] : memref<8x32xf32, #tpu.memory_space<vmem>>, vector<8x32xf32>
    %14 = arith.index_cast %11 : i32 to index
    %c0_10 = arith.constant 0 : index
    %15 = vector.load %arg8[%14, %c0_10] : memref<8x64xf32, #tpu.memory_space<vmem>>, vector<8x64xf32>
    %16 = vector.extract_strided_slice %13 {offsets = [0, 0], sizes = [8, 8], strides = [1, 1]} : vector<8x32xf32> to vector<8x8xf32>
    %17 = vector.extract_strided_slice %15 {offsets = [0, 0], sizes = [8, 8], strides = [1, 1]} : vector<8x64xf32> to vector<8x8xf32>
    %18 = vector.extract_strided_slice %15 {offsets = [0, 32], sizes = [8, 8], strides = [1, 1]} : vector<8x64xf32> to vector<8x8xf32>
    %cst_11 = arith.constant dense<0.000000e+00> : vector<8x8xf32>
    %19 = tpu.matmul %16, %17, %cst_11 {dimension_numbers = #tpu.dot_dimension_numbers<[1], [1], [0], [0], [0, 0, 1, 0], [], []>} : vector<8x8xf32>, vector<8x8xf32>, vector<8x8xf32> -> vector<8x8xf32>
    %cst_12 = arith.constant dense<0xFF800000> : vector<8xf32>
    %20 = vector.multi_reduction <maximumf>, %19, %cst_12 [1] : vector<8x8xf32> to vector<8xf32>
    %21 = vector.shape_cast %20 : vector<8xf32> to vector<8x1xf32>
    %22 = vector.broadcast %21 : vector<8x1xf32> to vector<8x8xf32>
    %23 = arith.subf %19, %22 : vector<8x8xf32>
    %24 = math.exp %23 : vector<8x8xf32>
    %cst_13 = arith.constant dense<0.000000e+00> : vector<8xf32>
    %25 = vector.multi_reduction <add>, %24, %cst_13 [1] : vector<8x8xf32> to vector<8xf32>
    %26 = vector.shape_cast %25 : vector<8xf32> to vector<8x1xf32>
    %cst_14 = arith.constant dense<0.000000e+00> : vector<8x8xf32>
    %27 = tpu.matmul %24, %18, %cst_14 {dimension_numbers = #tpu.dot_dimension_numbers<[1], [0], [0], [1], [0, 0, 1, 1], [], []>} : vector<8x8xf32>, vector<8x8xf32>, vector<8x8xf32> -> vector<8x8xf32>
    %28 = tpu.reciprocal %26 {approx = true} : vector<8x1xf32> -> vector<8x1xf32>
    %29 = vector.broadcast %28 : vector<8x1xf32> to vector<8x8xf32>
    %30 = arith.mulf %27, %29 : vector<8x8xf32>
    %31 = vector.extract_strided_slice %13 {offsets = [0, 8], sizes = [8, 8], strides = [1, 1]} : vector<8x32xf32> to vector<8x8xf32>
    %32 = vector.extract_strided_slice %15 {offsets = [0, 8], sizes = [8, 8], strides = [1, 1]} : vector<8x64xf32> to vector<8x8xf32>
    %33 = vector.extract_strided_slice %15 {offsets = [0, 40], sizes = [8, 8], strides = [1, 1]} : vector<8x64xf32> to vector<8x8xf32>
    %cst_15 = arith.constant dense<0.000000e+00> : vector<8x8xf32>
    %34 = tpu.matmul %31, %32, %cst_15 {dimension_numbers = #tpu.dot_dimension_numbers<[1], [1], [0], [0], [0, 0, 1, 0], [], []>} : vector<8x8xf32>, vector<8x8xf32>, vector<8x8xf32> -> vector<8x8xf32>
    %cst_16 = arith.constant dense<0xFF800000> : vector<8xf32>
    %35 = vector.multi_reduction <maximumf>, %34, %cst_16 [1] : vector<8x8xf32> to vector<8xf32>
    %36 = vector.shape_cast %35 : vector<8xf32> to vector<8x1xf32>
    %37 = vector.broadcast %36 : vector<8x1xf32> to vector<8x8xf32>
    %38 = arith.subf %34, %37 : vector<8x8xf32>
    %39 = math.exp %38 : vector<8x8xf32>
    %cst_17 = arith.constant dense<0.000000e+00> : vector<8xf32>
    %40 = vector.multi_reduction <add>, %39, %cst_17 [1] : vector<8x8xf32> to vector<8xf32>
    %41 = vector.shape_cast %40 : vector<8xf32> to vector<8x1xf32>
    %cst_18 = arith.constant dense<0.000000e+00> : vector<8x8xf32>
    %42 = tpu.matmul %39, %33, %cst_18 {dimension_numbers = #tpu.dot_dimension_numbers<[1], [0], [0], [1], [0, 0, 1, 1], [], []>} : vector<8x8xf32>, vector<8x8xf32>, vector<8x8xf32> -> vector<8x8xf32>
    %43 = tpu.reciprocal %41 {approx = true} : vector<8x1xf32> -> vector<8x1xf32>
    %44 = vector.broadcast %43 : vector<8x1xf32> to vector<8x8xf32>
    %45 = arith.mulf %42, %44 : vector<8x8xf32>
    %46 = vector.extract_strided_slice %13 {offsets = [0, 16], sizes = [8, 8], strides = [1, 1]} : vector<8x32xf32> to vector<8x8xf32>
    %47 = vector.extract_strided_slice %15 {offsets = [0, 16], sizes = [8, 8], strides = [1, 1]} : vector<8x64xf32> to vector<8x8xf32>
    %48 = vector.extract_strided_slice %15 {offsets = [0, 48], sizes = [8, 8], strides = [1, 1]} : vector<8x64xf32> to vector<8x8xf32>
    %cst_19 = arith.constant dense<0.000000e+00> : vector<8x8xf32>
    %49 = tpu.matmul %46, %47, %cst_19 {dimension_numbers = #tpu.dot_dimension_numbers<[1], [1], [0], [0], [0, 0, 1, 0], [], []>} : vector<8x8xf32>, vector<8x8xf32>, vector<8x8xf32> -> vector<8x8xf32>
    %cst_20 = arith.constant dense<0xFF800000> : vector<8xf32>
    %50 = vector.multi_reduction <maximumf>, %49, %cst_20 [1] : vector<8x8xf32> to vector<8xf32>
    %51 = vector.shape_cast %50 : vector<8xf32> to vector<8x1xf32>
    %52 = vector.broadcast %51 : vector<8x1xf32> to vector<8x8xf32>
    %53 = arith.subf %49, %52 : vector<8x8xf32>
    %54 = math.exp %53 : vector<8x8xf32>
    %cst_21 = arith.constant dense<0.000000e+00> : vector<8xf32>
    %55 = vector.multi_reduction <add>, %54, %cst_21 [1] : vector<8x8xf32> to vector<8xf32>
    %56 = vector.shape_cast %55 : vector<8xf32> to vector<8x1xf32>
    %cst_22 = arith.constant dense<0.000000e+00> : vector<8x8xf32>
    %57 = tpu.matmul %54, %48, %cst_22 {dimension_numbers = #tpu.dot_dimension_numbers<[1], [0], [0], [1], [0, 0, 1, 1], [], []>} : vector<8x8xf32>, vector<8x8xf32>, vector<8x8xf32> -> vector<8x8xf32>
    %58 = tpu.reciprocal %56 {approx = true} : vector<8x1xf32> -> vector<8x1xf32>
    %59 = vector.broadcast %58 : vector<8x1xf32> to vector<8x8xf32>
    %60 = arith.mulf %57, %59 : vector<8x8xf32>
    %61 = vector.extract_strided_slice %13 {offsets = [0, 24], sizes = [8, 8], strides = [1, 1]} : vector<8x32xf32> to vector<8x8xf32>
    %62 = vector.extract_strided_slice %15 {offsets = [0, 24], sizes = [8, 8], strides = [1, 1]} : vector<8x64xf32> to vector<8x8xf32>
    %63 = vector.extract_strided_slice %15 {offsets = [0, 56], sizes = [8, 8], strides = [1, 1]} : vector<8x64xf32> to vector<8x8xf32>
    %cst_23 = arith.constant dense<0.000000e+00> : vector<8x8xf32>
    %64 = tpu.matmul %61, %62, %cst_23 {dimension_numbers = #tpu.dot_dimension_numbers<[1], [1], [0], [0], [0, 0, 1, 0], [], []>} : vector<8x8xf32>, vector<8x8xf32>, vector<8x8xf32> -> vector<8x8xf32>
    %cst_24 = arith.constant dense<0xFF800000> : vector<8xf32>
    %65 = vector.multi_reduction <maximumf>, %64, %cst_24 [1] : vector<8x8xf32> to vector<8xf32>
    %66 = vector.shape_cast %65 : vector<8xf32> to vector<8x1xf32>
    %67 = vector.broadcast %66 : vector<8x1xf32> to vector<8x8xf32>
    %68 = arith.subf %64, %67 : vector<8x8xf32>
    %69 = math.exp %68 : vector<8x8xf32>
    %cst_25 = arith.constant dense<0.000000e+00> : vector<8xf32>
    %70 = vector.multi_reduction <add>, %69, %cst_25 [1] : vector<8x8xf32> to vector<8xf32>
    %71 = vector.shape_cast %70 : vector<8xf32> to vector<8x1xf32>
    %cst_26 = arith.constant dense<0.000000e+00> : vector<8x8xf32>
    %72 = tpu.matmul %69, %63, %cst_26 {dimension_numbers = #tpu.dot_dimension_numbers<[1], [0], [0], [1], [0, 0, 1, 1], [], []>} : vector<8x8xf32>, vector<8x8xf32>, vector<8x8xf32> -> vector<8x8xf32>
    %73 = tpu.reciprocal %71 {approx = true} : vector<8x1xf32> -> vector<8x1xf32>
    %74 = vector.broadcast %73 : vector<8x1xf32> to vector<8x8xf32>
    %75 = arith.mulf %72, %74 : vector<8x8xf32>
    %76 = tpu.concatenate %30, %45, %60, %75 in 1 : vector<8x8xf32>, vector<8x8xf32>, vector<8x8xf32>, vector<8x8xf32> -> vector<8x32xf32>
    %77 = arith.index_cast %11 : i32 to index
    %c0_27 = arith.constant 0 : index
    %78 = vector.load %arg9[%77, %c0_27] : memref<8x32xf32, #tpu.memory_space<vmem>>, vector<8x32xf32>
    tpu.vector_store %arg9[%77, %c0_27], %76 {strides = array<i32>} : memref<8x32xf32, #tpu.memory_space<vmem>>, vector<8x32xf32>,
    %c1_i32 = arith.constant 1 : i32
    %c0_28 = arith.constant 0 : index
    %c0_29 = arith.constant 0 : index
    %79 = vector.load %arg9[%c0_28, %c0_29] : memref<8x32xf32, #tpu.memory_space<vmem>>, vector<8x32xf32>
    %c0_30 = arith.constant 0 : index
    %c0_31 = arith.constant 0 : index
    %80 = vector.load %arg4[%c0_30, %c0_31] : memref<32x32xf32, #tpu.memory_space<vmem>>, vector<32x32xf32>
    %cst_32 = arith.constant dense<0.000000e+00> : vector<8x32xf32>
    %81 = tpu.matmul %79, %80, %cst_32 {dimension_numbers = #tpu.dot_dimension_numbers<[1], [0], [0], [1], [0, 0, 1, 1], [], []>} : vector<8x32xf32>, vector<32x32xf32>, vector<8x32xf32> -> vector<8x32xf32>
    %c0_33 = arith.constant 0 : index
    %c0_34 = arith.constant 0 : index
    %82 = vector.load %arg5[%c0_33, %c0_34] : memref<1x32xf32, #tpu.memory_space<vmem>>, vector<1x32xf32>
    %83 = vector.broadcast %82 : vector<1x32xf32> to vector<8x32xf32>
    %84 = arith.addf %81, %83 : vector<8x32xf32>
    %c0_35 = arith.constant 0 : index
    %c0_36 = arith.constant 0 : index
    %85 = vector.load %arg6[%c0_35, %c0_36] : memref<8x32xf32, #tpu.memory_space<vmem>>, vector<8x32xf32>
    tpu.vector_store %arg6[%c0_35, %c0_36], %84 {strides = array<i32>} : memref<8x32xf32, #tpu.memory_space<vmem>>, vector<8x32xf32>,
    return
  }
  func.func @transform_0(%arg0: i32) -> (i32, i32) {
    %c0_i32 = arith.constant 0 : i32
    %c0_i32_0 = arith.constant 0 : i32
    return %arg0, %c0_i32 : i32, i32
  }
  func.func @transform_1(%arg0: i32) -> (i32, i32) {
    %c0_i32 = arith.constant 0 : i32
    %c0_i32_0 = arith.constant 0 : i32
    %c0_i32_1 = arith.constant 0 : i32
    return %c0_i32, %c0_i32_0 : i32, i32
  }
  func.func @transform_2(%arg0: i32) -> (i32, i32) {
    %c0_i32 = arith.constant 0 : i32
    %c0_i32_0 = arith.constant 0 : i32
    %c0_i32_1 = arith.constant 0 : i32
    return %c0_i32, %c0_i32_0 : i32, i32
  }
  func.func @transform_3(%arg0: i32) -> (i32, i32) {
    %c0_i32 = arith.constant 0 : i32
    %c0_i32_0 = arith.constant 0 : i32
    %c0_i32_1 = arith.constant 0 : i32
    return %c0_i32, %c0_i32_0 : i32, i32
  }
  func.func @transform_4(%arg0: i32) -> (i32, i32) {
    %c0_i32 = arith.constant 0 : i32
    %c0_i32_0 = arith.constant 0 : i32
    %c0_i32_1 = arith.constant 0 : i32
    return %c0_i32, %c0_i32_0 : i32, i32
  }
  func.func @transform_5(%arg0: i32) -> (i32, i32) {
    %c0_i32 = arith.constant 0 : i32
    %c0_i32_0 = arith.constant 0 : i32
    return %arg0, %c0_i32 : i32, i32
  }
}

</mosaic_0001>

<bundles_post_ra>
// kernel: tpu_custom_call.1
= control target key start
LH: loop header
LB: loop body
LE: loop exit
PB: predicated region body
PF: predicated region fallthrough
CT: control target
= control target key end

     0   :  { %10 = vsyncpa [#allocation6], 0  ;;  %s1246_s0 = inlined_call_operand.hbm [shape: f32[16,32], index: 0, kind: input, shape index: {}]   ;;  %s1247_s1 = inlined_call_operand.hbm [shape: f32[32,96], index: 1, kind: input, shape index: {}]   ;;  %s1248_s2 = inlined_call_operand.vmem [shape: f32[1,96], index: 2, kind: input, shape index: {}]   ;;  %s1249_s3 = inlined_call_operand.hbm [shape: f32[32,32], index: 3, kind: input, shape index: {}]   ;;  %s1250_s4 = inlined_call_operand.vmem [shape: f32[1,32], index: 4, kind: input, shape index: {}]   ;;  %s1251_s5 = inlined_call_operand.hbm [shape: f32[16,32], index: 5, kind: output, shape index: {}]  }
   0x1   :  { %12 = vsyncpa [#allocation6 + $0x1], 0 }
   0x2   :  { %13 = vsyncpa [#allocation9], 0 }
   0x3   :  { %14 = vsyncpa [#allocation7], 0 }
   0x4   :  { %16 = vsyncpa [#allocation7 + $0x1], 0  ;;  %s1065_s18 = smov 0   ;;  %s1067_s19 = smov 0  }
   0x5   :  { %s1069_s20 = smov 0   ;;  %s1071_s21 = smov 0  }
   0x6 LB: > { %s174_s24 = sshll.u32 %s1247_s1, 4  ;;  %s1089_s25 = sadd.s32 4294967295, %s1019_s21   ;;  %s1019_s21 = sphi %s1071_s21, %s1262_s21   ;;  %s1015_s20 = sphi %s1069_s20, %s1261_s20   ;;  %s1011_s19 = sphi %s1067_s19, %s1260_s19   ;;  %s1007_s18 = sphi %s1065_s18, %s1259_s18   ;;  %s175_s24 = int_to_ptr.hbm [resolvable:$true] %s174_s24 }
   0x7   : > { %p733_p0 = scmp.ge.s32.totalorder %s1019_s21, 1  ;;  %p43_p1 = scmp.eq.s32.totalorder %s1089_s25, 0 }
   0x8   : > { %p163_p2 = scmp.lt.s32.totalorder %s1019_s21, 3  ;;  %s1021_s27 = smov [#allocation8]  }
   0x9   : > { %s176_s28 = sshll.u32 %s1021_s27, 4  ;;  %s191_s6 = sshll.u32 %s1249_s3, 4  ;;  %s177_s28 = int_to_ptr.vmem [resolvable:$true] %s176_s28  ;;  %s192_s6 = int_to_ptr.hbm [resolvable:$true] %s191_s6 }
   0xa   : > { %p1094_p3 = pnand %p733_p0, %p163_p2  ;;  %s1022_s7 = smov [#allocation10]  }
   0xb   : > { %s193_s8 = sshll.u32 %s1022_s7, 4  ;;  %s1023_s9 = smov 128   ;;  %s194_s8 = int_to_ptr.vmem [resolvable:$true] %s193_s8 }
   0xc   : > { %p774_p4 = pneg %p1094_p3  ;;  %s1024_s10 = smov 8  }
   0xd   : > { %s732_s11 = sadd.s32 4294967294, %s1019_s21   ;;  %s1108_s12 = sadd.s32 1, %s1019_s21  }
   0xe   : > { %p775_p6 = pnand %p774_p4, %p43_p1  ;;  %s26_s13 = ssub.s32 %s1019_s21, %s1108_s12 }
   0xf   : > { %s29_s14 = sadd.s32 1, %s1015_s20  ;;  %p27_p7 = scmp.eq.s32.totalorder %s26_s13, 0 }
  0x10   : > { %777 = dma.hbm_to_vmem [thread:$0]  (!%p775_p6), %s175_s24, 512, %s177_s28, [#allocation9], %s1023_s9, %s1023_s9, %s1024_s10  }
  0x11   : > { %780 = dma.hbm_to_vmem [thread:$0]  (!%p775_p6), %s192_s6, 512, %s194_s8, [#allocation9], %s1023_s9, %s1023_s9, %s1024_s10  }
  0x12   : > { %p36_p8 = scmp.ne.s32.totalorder %s1015_s20, %s1011_s19  ;;  %p37_p9 = scmp.eq.s32.totalorder %s1019_s21, 0 }
  0x13   : > { %p42_p10 = scmp.ne.s32.totalorder %s1011_s19, %s1007_s18  ;;  %p150_p13 = scmp.eq.s32.totalorder %s1089_s25, 1 }
  0x14   : > { %s1119_s15 = scalar_select %p27_p7, %s1015_s20, %s29_s14  }
  0x15   : > { %p1121_p11 = por %p37_p9, %p36_p8  ;;  %p1127_p12 = por %p43_p1, %p42_p10 }
  0x16   : > { %p156_p0 = scmp.eq.s32.totalorder %s732_s11, 1  ;;  %p791_p2 = scmp.lt.s32.totalorder %s1019_s21, 2 }
  0x17   : > { %s210_s22 = sand.u32 1, %s1015_s20   ;;  %p1134_p4 = por %p150_p13, %p36_p8 }
  0x18   : > { %p1138_p6 = por %p156_p0, %p42_p10  ;;  %s737_s27 = sshll.u32 %s210_s22, 3 }
  0x19   : > { %s738_s28 = sshll.u32 %s1019_s21, 3  ;;  %s214_s7 = scalar_lea.vmem [#allocation5], %s737_s27 }
  0x1a   : > { %s218_s6 = scalar_lea.hbm %s1246_s0, %s738_s28  ;;  %s222_s8 = sshll.u32 %s214_s7, 4  ;;  %s223_s8 = int_to_ptr.vmem [resolvable:$true] %s222_s8 }
  0x1b   : > { %s220_s9 = sshll.u32 %s218_s6, 4  ;;  %p1148_p7 = pnand %p791_p2, %p1121_p11  ;;  %s221_s9 = int_to_ptr.hbm [resolvable:$true] %s220_s9 }
  0x1c   : > { %s211_s11 = scalar_lea.sflag [#allocation6], %s210_s22  ;;  %s919_s13 = sshra.s32 %s221_s9, 4  ;;  %s920_s13 = int_to_ptr.hbm [resolvable:$true] %s919_s13 }
  0x1d   : > { %s921_s14 = scalar_lea.hbm %s920_s13, 8  ;;  %p923_p9 = pneg %p1148_p7 }
  0x1e   : > { %p922_p8 = scmp.ne.s32.totalorder %s920_s13, %s921_s14  ;;  %s926_s29 = scalar_lea.hbm %s1246_s0, 16 }
  0x1f   : > { %p927_p11 = scmp.lt.s32.totalorder %s920_s13, %s1246_s0  ;;  %p928_p0 = scmp.lt.s32.totalorder %s926_s29, %s921_s14 }
  0x20   : > { %p924_p10 = pnand %p923_p9, %p922_p8 }
  0x21   : > { %p929_p2 = por %p928_p0, %p927_p11 }
  0x22   : > { %p925_p13 = pneg %p924_p10 }
  0x24   : > { %p930_p5 = pnand %p929_p2, %p925_p13 }
  0x26   : > { %933 = shalt.err (!%p930_p5)
}
  0x27   : > { %784 = dma.hbm_to_vmem [thread:$0]  (!%p1148_p7), %s221_s9, 128, %s223_s8, %s211_s11  }
  0x28   : > { %231 = sbr.rel (%p1094_p3) target bundleno = 1089 (0x441), region = 40  ;;  %s1165_s22 = sand.u32 (!%p1094_p3), 1, %s1011_s19  }
  0x29   : > { %s740_s6 = sshll.u32 (!%p1094_p3), %s1165_s22, 3  ;;  %s234_s7 = scalar_lea.sflag (!%p1094_p3), [#allocation6], %s1165_s22 }
  0x2a   : > { %s237_s13 = scalar_lea.vmem (!%p1094_p3), [#allocation5], %s740_s6 }
  0x2d   : > { %994 = dma.done.wait (%p1127_p12), %s234_s7, 128  }
  0x2e   : > { %996 = vsyncadd (%p1127_p12), %s234_s7, 4294967168 }
  0x2f   : > { %998 = dma.done.wait (%p43_p1), [#allocation9], 1024  }
  0x30   : > { %1000 = vsyncadd (%p43_p1), [#allocation9], 4294966272  ;;  %v279_v0 = vld [vmem:[#allocation8 + $0x18] sm:$0xff]  ;;  %v278_v1 = vld [vmem:[#allocation8 + $0x10] sm:$0xff]  ;;  %vm284_vm0 = vcmask 261120   ;;  %s1025_s8 = smov 96  }
  0x31   : > { %300 = vmatpush.msra.mxu0 %v279_v0  ;;  %v277_v2 = vld [vmem:[#allocation8 + $0x8] sm:$0xff]  ;;  %v276_v3 = vld [vmem:[#allocation8] sm:$0xff]  ;;  %v275_v4 = vld [vmem:[%s237_s13] sm:$0xff]  ;;  %s1026_s9 = smov 120   ;;  %vm313_vm1 = vcmask 523264   ;;  %vm317_vm2 = vcmask 64512  }
  0x32   : > { %v841_v5 = vld [vmem:[%s1248_s2] ss:$0 sm:$0xff]  ;;  %s1027_s10 = smov 104   ;;  %s1028_s11 = smov 112   ;;  %v597_v63 = vld [vmem:[#allocation10 + $0x10] sm:$0xff]  ;;  %v596_v0 = vld [vmem:[#allocation10 + $0x8] sm:$0xff] }
  0x33   : > { %301 = vmatpush.msra.mxu0 %v278_v1  ;;  %s1029_s14 = smov 88   ;;  %s1030_s27 = smov 72   ;;  %v598_v62 = vld [vmem:[#allocation10 + $0x18] sm:$0xff]  ;;  %v595_v1 = vld [vmem:[#allocation10] sm:$0xff]  ;;  %vm589_vm3 = vcmask 130048   ;;  %vm591_vm4 = vcmask 195584  }
  0x34   : > { %s1031_s28 = smov 80   ;;  %s1032_s29 = smov 16  }
  0x35   : > { %302 = vmatpush.msra.mxu0 %v277_v2  ;;  %s1033_s30 = smov 8   ;;  %s1034_s16 = smov 24  }
  0x36   : > { %s759_s7 = sshll.u32 %s1089_s25, 3  ;;  %s628_s25 = scalar_lea.sflag [#allocation7], %s1165_s22 }
  0x37   : > { %303 = vmatpush.msra.mxu0 %v276_v3  ;;  %s638_s17 = scalar_lea.hbm %s1251_s5, %s759_s7 }
  0x38   : > { %744 = vmatmul.msk.f32.vlgmr.msra.gmra.mxu0 %vm284_vm0, %v275_v4 }
  0xb5   : > { %v305_v6 = vpop.f32.mrf.mxu0 }
  0xb6   : > { %v306_v7 = vadd.f32 %v841_v5, %v305_v6 }
  0xb8   : > { %308 = vst.msk [vmem:[#allocation2] sm:$0xff] %vm284_vm0, %v306_v7  ;;  %310 = vrot.lane.b32.xlu0 %v306_v7, %s1025_s8 }
  0xbf   : > { %v315_v8 = vld [vmem:[#allocation2] sm:$0xff] }
  0xc0   : > { %381 = vrot.lane.b32.xlu1 %v315_v8, %s1026_s9 }
 0x12a   : > { %v311_v9 = vpop.permute.xlu0 %310 }
 0x12b   : > { %314 = vst.msk [vmem:[#allocation3] sm:$0xff] %vm313_vm1, %v311_v9 }
 0x132   : > { %v316_v10 = vld [vmem:[#allocation3] sm:$0xff]  ;;  %v382_v12 = vpop.permute.xlu1 %381 }
 0x133   : > { %513 = vrot.lane.b32.xlu2 %v316_v10, %s1027_s10  ;;  %383 = vrot.lane.b32.xlu0 %v316_v10, %s1026_s9 }
 0x134   : > { %745 = vmatpush.xpose.msk.msra.mxu1 %vm317_vm2, %v316_v10  ;;  %448 = vrot.lane.b32.xlu1 %v316_v10, %s1028_s11 }
 0x137   : > { %746 = vmatmul.msk.f32.vlgmr.msra.gmra.mxu1 %vm317_vm2, %v315_v8 }
 0x13b   : > { %511 = vrot.lane.b32.xlu0 %v315_v8, %s1027_s10  ;;  %446 = vrot.lane.b32.xlu2 %v315_v8, %s1028_s11  ;;  %s274_s10 = scalar_lea.vmem [#allocation11], %s740_s6  ;;  %s969_s6 = scalar_lea.hbm %s1251_s5, 16 }
 0x13c   : > { %s640_s11 = sshll.u32 %s274_s10, 4  ;;  %s641_s11 = int_to_ptr.vmem [resolvable:$true] %s640_s11 }
 0x143   : > { %353 = vrot.lane.b32.xlu0 %v316_v10, %s1025_s8 }
 0x18d   : > { %v514_v11 = vpop.permute.xlu2 %513 }
 0x18e   : > { %754 = vmatpush.xpose.msk.msrb.mxu0 %vm317_vm2, %v514_v11 }
 0x195   : > { %v447_v15 = vpop.permute.xlu2 %446 }
 0x1a5   : > { %v384_v13 = vpop.permute.xlu0 %383 }
 0x1a6   : > { %v449_v14 = vpop.permute.xlu1 %448  ;;  %748 = vmatpush.xpose.msk.msra.mxu3 %vm317_vm2, %v384_v13 }
 0x1a7   : > { %751 = vmatpush.xpose.msk.msrb.mxu1 %vm317_vm2, %v449_v14 }
 0x1a9   : > { %749 = vmatmul.msk.f32.vlgmr.msra.gmra.mxu3 %vm317_vm2, %v382_v12  ;;  %v842_v12 = vld [vmem:[%s1250_s4] ss:$0 sm:$0xff] }
 0x1aa   : > { %752 = vmatmul.msk.f32.vlgmr.msrb.gmra.mxu1 %vm317_vm2, %v447_v15 }
 0x1ab   : > { %618 = vmatpush.msra.mxu1 %v598_v62 }
 0x1ad   : > { %v512_v16 = vpop.permute.xlu0 %511  ;;  %619 = vmatpush.msra.mxu1 %v597_v63 }
 0x1ae   : > { %755 = vmatmul.msk.f32.vlgmr.msrb.gmra.mxu0 %vm317_vm2, %v512_v16 }
 0x1af   : > { %620 = vmatpush.msra.mxu1 %v596_v0 }
 0x1b1   : > { %621 = vmatpush.msra.mxu1 %v595_v1 }
 0x1b4   : > { %v341_v17 = vpop.f32.mrf.mxu1 }
 0x1b5   : > { %v354_v18 = vpop.permute.xlu0 %353  ;;  %v344_v19 = vsel %vm317_vm2, %v341_v17, -inf }
 0x1b6   : > { %345 = vmax.xlane.f32.xlu1 %v344_v19  ;;  %374 = vmatpush.msra.mxu2 %v354_v18 }
 0x1cf   : > { %418 = vrot.lane.b32.xlu1 %v316_v10, %s1029_s14  ;;  %s642_s14 = sshll.u32 %s638_s17, 4  ;;  %s643_s14 = int_to_ptr.hbm [resolvable:$true] %s642_s14 }
 0x227   : > { %v471_v20 = vpop.f32.mrf.mxu1 }
 0x228   : > { %v474_v21 = vsel %vm317_vm2, %v471_v20, -inf }
 0x229   : > { %475 = vmax.xlane.f32.xlu0 %v474_v21  ;;  %v346_v22 = vpop.xlane.xlu1 %345 }
 0x22a   : > { %v347_v23 = vsub.f32 %v341_v17, %v346_v22 }
 0x22b   : > { %v536_v24 = vpop.f32.mrf.mxu0 }
 0x22c   : > { %v348_v25 = vmul.f32 1.442695, %v347_v23  ;;  %v539_v26 = vsel %vm317_vm2, %v536_v24, -inf  ;;  %v406_v27 = vpop.f32.mrf.mxu3 }
 0x22d   : > { %540 = vmax.xlane.f32.xlu2 %v539_v26  ;;  %v409_v29 = vsel %vm317_vm2, %v406_v27, -inf }
 0x22e   : > { %843 = vpow2.f32 %v348_v25 }
 0x234   : > { %v844_v28 = vpop.eup %843 }
 0x235   : > { %747 = vmatmul.msk.f32.vlgmr.msra.gmra.mxu2 %vm317_vm2, %v844_v28  ;;  %410 = vmax.xlane.f32.xlu2 %v409_v29  ;;  %v350_v48 = vsel %vm317_vm2, %v844_v28, 0.0 }
 0x23d   : > { %548 = vrot.lane.b32.xlu0 %v316_v10, %s1030_s27  ;;  %s963_s27 = sshra.s32 %s643_s14, 4  ;;  %s964_s27 = int_to_ptr.hbm [resolvable:$true] %s963_s27 }
 0x23e   : > { %p970_p12 = scmp.lt.s32.totalorder %s964_s27, %s1251_s5 }
 0x241   : > { %v419_v30 = vpop.permute.xlu1 %418 }
 0x242   : > { %439 = vmatpush.msrb.mxu2 %v419_v30 }
 0x24d   : > { %483 = vrot.lane.b32.xlu2 %v316_v10, %s1031_s28  ;;  %s965_s28 = scalar_lea.hbm %s964_s27, 8 }
 0x24e   : > { %p966_p1 = scmp.ne.s32.totalorder %s964_s27, %s965_s28  ;;  %p971_p7 = scmp.lt.s32.totalorder %s969_s6, %s965_s28 }
 0x250   : > { %p967_p3 = pnand %p966_p1, %p1134_p4  ;;  %p972_p8 = por %p971_p7, %p970_p12 }
 0x252   : > { %p968_p5 = pneg %p967_p3 }
 0x254   : > { %p973_p9 = pnand %p972_p8, %p968_p5 }
 0x29c   : > { %v476_v31 = vpop.xlane.xlu0 %475 }
 0x29d   : > { %v477_v32 = vsub.f32 %v471_v20, %v476_v31 }
 0x29f   : > { %v478_v33 = vmul.f32 1.442695, %v477_v32 }
 0x2a0   : > { %v541_v34 = vpop.xlane.xlu2 %540 }
 0x2a1   : > { %845 = vpow2.f32 %v478_v33  ;;  %v542_v35 = vsub.f32 %v536_v24, %v541_v34 }
 0x2a3   : > { %v543_v36 = vmul.f32 1.442695, %v542_v35 }
 0x2a5   : > { %847 = vpow2.f32 %v543_v36 }
 0x2a7   : > { %v846_v37 = vpop.eup %845 }
 0x2a8   : > { %v411_v38 = vpop.xlane.xlu2 %410  ;;  %v480_v39 = vsel %vm317_vm2, %v846_v37, 0.0 }
 0x2a9   : > { %v412_v40 = vsub.f32 %v406_v27, %v411_v38  ;;  %481 = vadd.xlane.f32.xlu2 %v480_v39 }
 0x2ab   : > { %v848_v41 = vpop.eup %847  ;;  %v413_v42 = vmul.f32 1.442695, %v412_v40 }
 0x2ac   : > { %v545_v43 = vsel %vm317_vm2, %v848_v41, 0.0 }
 0x2ad   : > { %849 = vpow2.f32 %v413_v42  ;;  %546 = vadd.xlane.f32.xlu0 %v545_v43 }
 0x2af   : > { %v549_v44 = vpop.permute.xlu0 %548 }
 0x2b0   : > { %569 = vmatpush.msra.mxu2 %v549_v44  ;;  %v484_v45 = vpop.permute.xlu2 %483 }
 0x2b1   : > { %504 = vmatpush.msrb.mxu3 %v484_v45 }
 0x2b2   : > { %753 = vmatmul.msk.f32.vlgmr.msrb.gmra.mxu3 %vm317_vm2, %v846_v37 }
 0x2b3   : > { %v850_v46 = vpop.eup %849 }
 0x2b4   : > { %750 = vmatmul.msk.f32.vlgmr.msrb.gmra.mxu2 %vm317_vm2, %v850_v46  ;;  %v415_v47 = vsel %vm317_vm2, %v850_v46, 0.0 }
 0x2b5   : > { %416 = vadd.xlane.f32.xlu1 %v415_v47 }
 0x2b8   : > { %v376_v51 = vpop.f32.mrf.mxu2 }
 0x2bc   : > { %756 = vmatmul.msk.f32.vlgmr.msra.gmra.mxu2 %vm317_vm2, %v848_v41 }
 0x2bd   : > { %351 = vadd.xlane.f32.xlu1 %v350_v48 }
 0x31c   : > { %v482_v49 = vpop.xlane.xlu2 %481 }
 0x31d   : > { %851 = vrcp.f32 %v482_v49 }
 0x320   : > { %v547_v54 = vpop.xlane.xlu0 %546 }
 0x323   : > { %v852_v52 = vpop.eup %851 }
 0x328   : > { %v417_v50 = vpop.xlane.xlu1 %416 }
 0x329   : > { %853 = vrcp.f32 %v417_v50 }
 0x32a   : > { %855 = vrcp.f32 %v547_v54 }
 0x32f   : > { %v854_v56 = vpop.eup %853 }
 0x330   : > { %v856_v59 = vpop.eup %855  ;;  %v352_v2 = vpop.xlane.xlu1 %351 }
 0x331   : > { %857 = vrcp.f32 %v352_v2 }
 0x335   : > { %v506_v53 = vpop.f32.mrf.mxu3 }
 0x336   : > { %v510_v55 = vmul.f32 %v852_v52, %v506_v53 }
 0x337   : > { %v441_v57 = vpop.f32.mrf.mxu2  ;;  %v858_v3 = vpop.eup %857 }
 0x338   : > { %v445_v58 = vmul.f32 %v854_v56, %v441_v57  ;;  %581 = vrot.lane.b32.xlu1 %v510_v55, %s1032_s29  ;;  %v380_v5 = vmul.f32 %v858_v3, %v376_v51 }
 0x33a   : > { %577 = vrot.lane.b32.xlu2 %v445_v58, %s1033_s30 }
 0x33f   : > { %v571_v60 = vpop.f32.mrf.mxu2 }
 0x340   : > { %v575_v61 = vmul.f32 %v856_v59, %v571_v60 }
 0x342   : > { %585 = vrot.lane.b32.xlu0 %v575_v61, %s1034_s16 }
 0x394   : > { %v578_v4 = vpop.permute.xlu2 %577 }
 0x395   : > { %v588_v7 = vsel %vm317_vm2, %v380_v5, %v578_v4 }
 0x3aa   : > { %v582_v6 = vpop.permute.xlu1 %581 }
 0x3ab   : > { %v590_v8 = vsel %vm589_vm3, %v588_v7, %v582_v6 }
 0x3b4   : > { %v586_v9 = vpop.permute.xlu0 %585 }
 0x3b5   : > { %v592_v10 = vsel %vm591_vm4, %v590_v8, %v586_v9 }
 0x3b6   : > { %593 = vst.msk [vmem:[#allocation4] sm:$0xff] %vm284_vm0, %v592_v10 }
 0x3bd   : > { %v594_v11 = vld [vmem:[#allocation4] sm:$0xff] }
 0x3be   : > { %757 = vmatmul.msk.f32.vlgmr.msra.gmra.mxu1 %vm284_vm0, %v594_v11 }
 0x43b   : > { %v623_v13 = vpop.f32.mrf.mxu1 }
 0x43c   : > { %v624_v14 = vadd.f32 %v842_v12, %v623_v13 }
 0x43e   : > { %626 = vst.msk [vmem:[%s274_s10] sm:$0xff] %vm284_vm0, %v624_v14 }
 0x43f   : > { %976 = shalt.err (!%p973_p9)
}
 0x440   : > { %772 = dma.vmem_to_hbm [thread:$0]  (%p1134_p4), %s641_s11, 128, %s643_s14, %s628_s25  }
 0x441 PF: > { %s654_s22 = sand.u32 1, %s1007_s18   ;;  %p1258_p10 = scmp.ge.s32.totalorder %s1019_s21, 2 }
 0x442   : > { %s655_s13 = scalar_lea.sflag [#allocation7], %s654_s22 }
 0x443   : > { %p786_p13 = pnand %p1258_p10, %p1138_p6 }
 0x445   : > { %p787_p11 = pneg %p786_p13 }
 0x447   : > { %1002 = dma.done.wait (%p787_p11), %s655_s13, 128  }
 0x448   : > { %1004 = vsyncadd (%p787_p11), %s655_s13, 4294967168  ;;  %p19_p0 = scmp.ge.s32.totalorder %s1108_s12, 4   ;;  %s1259_s18 = smov %s1011_s19 }
 0x449   : > { %s1260_s19 = smov %s1015_s20  ;;  %s1261_s20 = smov %s1119_s15 }
 0x44a   : > { %s1262_s21 = smov %s1108_s12  ;;  %21 = sbr.rel (!%p19_p0) target bundleno = 6 (0x6), region = 93 }
 0x44f   :  { %661 = vsyncpa [#allocation6], 1 }
 0x450   :  { %663 = vsyncpa [#allocation6 + $0x1], 1 }
 0x451   :  { %664 = vsyncpa [#allocation9], 1 }
 0x452   :  { %665 = vsyncpa [#allocation7], 1 }
 0x453   :  { %667 = vsyncpa [#allocation7 + $0x1], 1 }

</bundles_post_ra>
